<compile_context>
chip_gen: v6e
topology: v6e:2x2x1
jax: 0.10.0
libtpu: 0.0.40
codegen_flags: <defaults>
</compile_context>

<pallas_src>
import math

import jax
import jax.numpy as jnp
from jax.experimental import pallas as pl
from jax.experimental.pallas import tpu as pltpu


def fromrgb_kernel(x_ref, w_ref, b_ref, o_ref):
    """FromRGB block: lane-dense broadcast multiply-add + LeakyReLU(0.2).

    x_ref: (1, 1, TP)      pixels in lanes
    w_ref: (Cout, 1)       per-output-channel weight (equalized scale folded in)
    b_ref: (Cout, 1)       bias
    o_ref: (1, Cout, TP)   NCHW-compatible output block
    """
    x = x_ref[...].astype(jnp.float32)   # (1, 1, TP)
    w = w_ref[...].astype(jnp.float32)   # (Cout, 1)
    b = b_ref[...].astype(jnp.float32)   # (Cout, 1)
    # Pure VPU: (1,1,TP) * (Cout,1) + (Cout,1) -> (1, Cout, TP).  No MXU.
    y = x * w + b
    # LeakyReLU(0.2): one vmul + one vmax (cheaper than compare+select+mul).
    o_ref[...] = jnp.maximum(y, 0.2 * y).astype(o_ref.dtype)


def from_rgb(x_nchw, weight_oihw, bias, *, out_dtype=None,
             target_out_tile_bytes=2 << 20):
    """x_nchw: (N, 1, H, W); weight_oihw: (Cout, 1, 1, 1); bias: (Cout,).

    Returns (N, Cout, H, W) in `out_dtype` (defaults to x.dtype; pass
    jnp.bfloat16 to halve output HBM traffic if the consumer tolerates it).
    """
    N, Cin, H, W = x_nchw.shape
    Cout = weight_oihw.shape[0]
    assert Cin == 1 and weight_oihw.shape[1:] == (1, 1, 1)
    out_dtype = x_nchw.dtype if out_dtype is None else out_dtype

    scale = 1.0 / math.sqrt(Cin * 1 ** 2)   # EqualizedConv2d scale (== 1 here)

    hw = H * W
    dtype_bytes = jnp.dtype(out_dtype).itemsize
    # Pixel-tile: ~target_out_tile_bytes per output block, multiple of 128,
    # capped at the (128-rounded) per-image pixel count.
    tp = max(128, (target_out_tile_bytes // (Cout * dtype_bytes)) // 128 * 128)
    tp = min(tp, pl.cdiv(hw, 128) * 128)
    hw_pad = pl.cdiv(hw, tp) * tp
    n_tiles = hw_pad // tp

    # Layout plumbing (pure reshapes — Cin == 1, so no transpose is needed).
    x_flat = x_nchw.reshape(N, 1, hw)
    if hw_pad != hw:
        x_flat = jnp.pad(x_flat, ((0, 0), (0, 0), (0, hw_pad - hw)))
    w_col = (weight_oihw.reshape(Cout, 1) * scale).astype(jnp.float32)
    b_col = bias.reshape(Cout, 1).astype(jnp.float32)

    out = pl.pallas_call(
        fromrgb_kernel,
        out_shape=jax.ShapeDtypeStruct((N, Cout, hw_pad), out_dtype),
        grid_spec=pltpu.PrefetchScalarGridSpec(
            num_scalar_prefetch=0,
            grid=(N, n_tiles),
            in_specs=[
                pl.BlockSpec((1, 1, tp), lambda n, t: (n, 0, t)),
                pl.BlockSpec((Cout, 1), lambda n, t: (0, 0)),
                pl.BlockSpec((Cout, 1), lambda n, t: (0, 0)),
            ],
            out_specs=pl.BlockSpec((1, Cout, tp), lambda n, t: (n, 0, t)),
        ),
        compiler_params=pltpu.CompilerParams(
            dimension_semantics=("parallel", "parallel"),
        ),
    )(x_flat, w_col, b_col)

    if hw_pad != hw:
        out = out[:, :, :hw]
    # Pure reshape back to NCHW (no transpose).
    return out.reshape(N, Cout, H, W)


def _ref_fromrgb(x, weight, bias):
    cout = weight.shape[0]
    y = x * weight.reshape(1, cout, 1, 1) + bias.reshape(1, cout, 1, 1)
    return jnp.where(y > 0, y, 0.2 * y)


if __name__ == "__main__":
    key = jax.random.PRNGKey(0)
    k_x, k_w, k_x2, k_b2 = jax.random.split(key, 4)

    # FromRGB of StyleGANXLDiscriminator: (N, 1, H, W) -> (N, Cout, H, W)
    N, H, W = 2, 16, 16
    out_channels = 32

    # Deterministic "init": weight ~ N(0,1) like torch.randn, bias = zeros.
    x = jax.random.normal(k_x, (N, 1, H, W), dtype=jnp.float32)
    weight = jax.random.normal(k_w, (out_channels, 1, 1, 1), dtype=jnp.float32)
    bias = jnp.zeros((out_channels,), dtype=jnp.float32)

    out = jax.block_until_ready(from_rgb(x, weight, bias))
    ref = _ref_fromrgb(x, weight, bias)
    assert out.shape == (N, out_channels, H, W)
    assert jnp.allclose(out, ref, atol=1e-5, rtol=1e-5)

    # Ragged spatial size + nonzero bias (exercises padded last pixel tile).
    x2 = jax.random.normal(k_x2, (1, 1, 10, 12), dtype=jnp.float32)
    bias2 = jax.random.normal(k_b2, (out_channels,), dtype=jnp.float32)
    out2 = jax.block_until_ready(from_rgb(x2, weight, bias2))
    assert out2.shape == (1, out_channels, 10, 12)
    assert jnp.allclose(out2, _ref_fromrgb(x2, weight, bias2), atol=1e-5, rtol=1e-5)

    print("KERNEL_OK")
</pallas_src>

<mosaic_0001>
module attributes {stable_mosaic.version = 11 : i64} {
  func.func @fromrgb_kernel(%arg0: i32, %arg1: i32, %arg2: memref<1x1x256xf32, #tpu.memory_space<vmem>>, %arg3: memref<32x1xf32, #tpu.memory_space<vmem>>, %arg4: memref<32x1xf32, #tpu.memory_space<vmem>>, %arg5: memref<1x32x256xf32, #tpu.memory_space<vmem>>) attributes {dimension_semantics = [#tpu.dimension_semantics<parallel>, #tpu.dimension_semantics<parallel>], iteration_bounds = array<i64: 2, 1>, scalar_prefetch = 0 : i64, scratch_operands = 0 : i64, tpu.core_type = #tpu.core_type<tc>, window_params = [{transform_indices = @transform_0, window_bounds = array<i64: 1, 1, 256>}, {pipeline_mode = #tpu.pipeline_mode<synchronous>, transform_indices = @transform_1, window_bounds = array<i64: 32, 1>}, {pipeline_mode = #tpu.pipeline_mode<synchronous>, transform_indices = @transform_2, window_bounds = array<i64: 32, 1>}, {transform_indices = @transform_3, window_bounds = array<i64: 1, 32, 256>}]} {
    %c0 = arith.constant 0 : index
    %c0_0 = arith.constant 0 : index
    %c0_1 = arith.constant 0 : index
    %0 = vector.load %arg2[%c0, %c0_0, %c0_1] : memref<1x1x256xf32, #tpu.memory_space<vmem>>, vector<1x1x256xf32>
    %c0_2 = arith.constant 0 : index
    %c0_3 = arith.constant 0 : index
    %1 = vector.load %arg3[%c0_2, %c0_3] : memref<32x1xf32, #tpu.memory_space<vmem>>, vector<32x1xf32>
    %c0_4 = arith.constant 0 : index
    %c0_5 = arith.constant 0 : index
    %2 = vector.load %arg4[%c0_4, %c0_5] : memref<32x1xf32, #tpu.memory_space<vmem>>, vector<32x1xf32>
    %3 = vector.shape_cast %1 : vector<32x1xf32> to vector<1x32x1xf32>
    %4 = vector.broadcast %0 : vector<1x1x256xf32> to vector<1x32x256xf32>
    %5 = vector.broadcast %3 : vector<1x32x1xf32> to vector<1x32x256xf32>
    %6 = arith.mulf %4, %5 : vector<1x32x256xf32>
    %7 = vector.shape_cast %2 : vector<32x1xf32> to vector<1x32x1xf32>
    %8 = vector.broadcast %7 : vector<1x32x1xf32> to vector<1x32x256xf32>
    %9 = arith.addf %6, %8 : vector<1x32x256xf32>
    %cst = arith.constant 2.000000e-01 : f32
    %10 = vector.broadcast %cst : f32 to vector<1x32x256xf32>
    %11 = arith.mulf %10, %9 : vector<1x32x256xf32>
    %12 = arith.maximumf %9, %11 : vector<1x32x256xf32>
    %c0_6 = arith.constant 0 : index
    %c0_7 = arith.constant 0 : index
    %c0_8 = arith.constant 0 : index
    %13 = vector.load %arg5[%c0_6, %c0_7, %c0_8] : memref<1x32x256xf32, #tpu.memory_space<vmem>>, vector<1x32x256xf32>
    tpu.vector_store %arg5[%c0_6, %c0_7, %c0_8], %12 {strides = array<i32>} : memref<1x32x256xf32, #tpu.memory_space<vmem>>, vector<1x32x256xf32>,
    return
  }
  func.func @transform_0(%arg0: i32, %arg1: i32) -> (i32, i32, i32) {
    %c0_i32 = arith.constant 0 : i32
    %c0_i32_0 = arith.constant 0 : i32
    return %arg0, %c0_i32, %arg1 : i32, i32, i32
  }
  func.func @transform_1(%arg0: i32, %arg1: i32) -> (i32, i32) {
    %c0_i32 = arith.constant 0 : i32
    %c0_i32_0 = arith.constant 0 : i32
    %c0_i32_1 = arith.constant 0 : i32
    return %c0_i32, %c0_i32_0 : i32, i32
  }
  func.func @transform_2(%arg0: i32, %arg1: i32) -> (i32, i32) {
    %c0_i32 = arith.constant 0 : i32
    %c0_i32_0 = arith.constant 0 : i32
    %c0_i32_1 = arith.constant 0 : i32
    return %c0_i32, %c0_i32_0 : i32, i32
  }
  func.func @transform_3(%arg0: i32, %arg1: i32) -> (i32, i32, i32) {
    %c0_i32 = arith.constant 0 : i32
    %c0_i32_0 = arith.constant 0 : i32
    return %arg0, %c0_i32, %arg1 : i32, i32, i32
  }
}

</mosaic_0001>

<bundles_post_ra>
// kernel: tpu_custom_call.1
= control target key start
LH: loop header
LB: loop body
LE: loop exit
PB: predicated region body
PF: predicated region fallthrough
CT: control target
= control target key end

     0   :  { %8 = vsyncpa [#allocation3], 0  ;;  %s706_s0 = inlined_call_operand.vmem [shape: f32[2,1,256], index: 0, kind: input, shape index: {}]   ;;  %s707_s1 = inlined_call_operand.vmem [shape: f32[32,1], index: 1, kind: input, shape index: {}]   ;;  %s708_s2 = inlined_call_operand.vmem [shape: f32[32,1], index: 2, kind: input, shape index: {}]   ;;  %s709_s3 = inlined_call_operand.hbm [shape: f32[2,32,256], index: 3, kind: output, shape index: {}]  }
   0x1   :  { %10 = vsyncpa [#allocation3 + $0x1], 0  ;;  %s564_s12 = smov 0   ;;  %s566_s13 = smov 0  }
   0x2   :  { %s568_s14 = smov 0   ;;  %s570_s15 = smov 0  }
   0x3   :  { %s572_s16 = smov 0   ;;  %s574_s17 = smov 0  }
   0x4 LB: > { %s389_s18 = sadd.s32 4294967295, %s538_s17   ;;  %s390_s19 = sadd.s32 4294967294, %s538_s17   ;;  %s538_s17 = sphi %s574_s17, %s16_s17   ;;  %s534_s16 = sphi %s572_s16, %s716_s16   ;;  %s530_s15 = sphi %s570_s15, %s715_s15   ;;  %s526_s14 = sphi %s568_s14, %s714_s14   ;;  %s522_s13 = sphi %s566_s13, %s713_s13   ;;  %s518_s12 = sphi %s564_s12, %s712_s12  }
   0x5   : > { %s28_s20 = sadd.s32 1, %s534_s16  ;;  %s107_s21 = sadd.s32 1, %s526_s14 }
   0x6   : > { %p30_p0 = scmp.ge.s32.totalorder %s28_s20, 2  ;;  %p117_p1 = scmp.ne.s32.totalorder %s526_s14, %s522_s13 }
   0x7   : > { %p118_p2 = scmp.eq.s32.totalorder %s389_s18, 1  ;;  %p123_p3 = scmp.ne.s32.totalorder %s522_s13, %s518_s12 }
   0x8   : > { %s718_s20 = smov (%p30_p0, %s28_s20), 0  ;;  %p124_p5 = scmp.eq.s32.totalorder %s390_s19, 1 }
   0x9   : > { %p604_p4 = por %p118_p2, %p117_p1  ;;  %s102_s23 = ssub.s32 %s534_s16, %s718_s20 }
   0xa   : > { %p393_p6 = scmp.ge.s32.totalorder %s538_s17, 1  ;;  %p105_p7 = scmp.eq.s32.totalorder %s102_s23, 0 }
   0xb   : > { %p611_p8 = por %p124_p5, %p123_p3  ;;  %p160_p9 = scmp.lt.s32.totalorder %s538_s17, 3 }
   0xc   : > { %s617_s25 = scalar_select %p105_p7, %s526_s14, %s107_s21  }
   0xd   : > { %p161_p10 = pnand %p393_p6, %p160_p9 }
   0xe   : > { %p188_p11 = scmp.lt.s32.totalorder (!%p161_p10), %s530_s15, 1  ;;  %s184_s30 = sand.u32 (!%p161_p10), 1, %s522_s13  }
   0xf   : > { %164 = sbr.rel (%p161_p10) target bundleno = 180 (0xb4), region = 32  ;;  %s394_s4 = sshll.u32 (!%p161_p10), %s184_s30, 6 }
  0x10   : > { %s401_s5 = sshll.u32 (!%p161_p10), %s530_s15, 10  ;;  %s186_s6 = scalar_lea.vmem (!%p161_p10), [#allocation2], %s394_s4 }
  0x11   : > { %s313_s7 = sshll.u32 (!%p161_p10), %s186_s6, 4  ;;  %s655_s10 = scalar_lea.hbm (!%p161_p10), %s709_s3, %s401_s5  ;;  %s657_s7 = int_to_ptr.vmem [resolvable:$true] %s313_s7 }
  0x12   : > { %s462_s11 = scalar_lea.vmem (!%p161_p10), %s657_s7, 1024  ;;  %s541_s18 = smov (!%p161_p10), [#allocation2]  }
  0x13   : > { %p463_p12 = scmp.ne.s32.totalorder (!%p161_p10), %s657_s7, %s462_s11  ;;  %s466_s19 = sshll.u32 (!%p161_p10), %s541_s18, 4  ;;  %s467_s19 = int_to_ptr.vmem [resolvable:$false] %s466_s19 }
  0x14   : > { %v200_v0 = vld [vmem:[%s707_s1 + $0x10] sm:$0xff]  ;;  %v198_v1 = vld [vmem:[%s707_s1] sm:$0xff]  ;;  %v540_v2 = vmov 0   ;;  %v201_v3 = vld [vmem:[%s707_s1 + $0x18] sm:$0xff]  ;;  %s189_s23 = scalar_select %p188_p11, %s530_s15, 1  ;;  %v207_v9 = vlaneseq }
  0x15   : > { %461 = vset.pattern.permute.xlu1 %v540_v2  ;;  %460 = vset.pattern.permute.xlu0 %v540_v2  ;;  %v199_v4 = vld [vmem:[%s707_s1 + $0x8] sm:$0xff]  ;;  %v202_v6 = vld [vmem:[%s708_s2] sm:$0xff]  ;;  %v205_v7 = vld [vmem:[%s708_s2 + $0x18] sm:$0xff]  ;;  %s661_s15 = scalar_lea.sflag [#allocation3], %s184_s30  ;;  %p464_p13 = pnand %p463_p12, %p604_p4 }
  0x16   : > { %229 = vperm.xlu1 %461, %v200_v0   ;;  %219 = vperm.xlu0 %460, %v198_v1   ;;  %v203_v5 = vld [vmem:[%s708_s2 + $0x8] sm:$0xff]  ;;  %v204_v8 = vld [vmem:[%s708_s2 + $0x10] sm:$0xff]  ;;  %s395_s26 = sshll.u32 %s189_s23, 1  ;;  %v208_v10 = vshrl.u32 %v207_v9, 7  ;;  %s468_s21 = scalar_lea.vmem %s467_s19, 2048 }
  0x17   : > { %s194_s29 = scalar_lea.vmem %s706_s0, %s395_s26  ;;  %p465_p0 = pneg %p464_p13 }
  0x18   : > { %v209_v11 = vsub.s32 0, %v208_v10  ;;  %v213_v12 = vsub.s32 1, %v208_v10  ;;  %v197_v14 = vld [vmem:[%s194_s29] sm:$0x3]  ;;  %p469_p1 = scmp.lt.s32.totalorder %s657_s7, %s467_s19  ;;  %p470_p2 = scmp.lt.s32.totalorder %s468_s21, %s462_s11 }
  0x1a   : > { %234 = vperm.xlu1 %461, %v201_v3   ;;  %224 = vperm.xlu0 %460, %v199_v4   ;;  %v210_v16 = vrot.slane %v197_v14, %v209_v11  ;;  %v214_v17 = vrot.slane %v197_v14, %v213_v12  ;;  %p471_p3 = por %p470_p2, %p469_p1 }
  0x1c   : > { %p472_p5 = pnand %p471_p3, %p465_p0 }
  0x1e   : > { %252 = vperm.xlu1 %461, %v203_v5   ;;  %247 = vperm.xlu0 %460, %v202_v6  }
  0x22   : > { %262 = vperm.xlu1 %461, %v205_v7   ;;  %257 = vperm.xlu0 %460, %v204_v8  }
  0x91   : > { %v230_v13 = vpop.permute.xlu1 %229  ;;  %v220_v15 = vpop.permute.xlu0 %219 }
  0x92   : > { %v237_v20 = vmul.f32 %v220_v15, %v210_v16  ;;  %v238_v21 = vmul.f32 %v220_v15, %v214_v17  ;;  %v241_v34 = vmul.f32 %v230_v13, %v210_v16  ;;  %v242_v35 = vmul.f32 %v230_v13, %v214_v17 }
  0x95   : > { %v235_v18 = vpop.permute.xlu1 %234  ;;  %v225_v19 = vpop.permute.xlu0 %224 }
  0x96   : > { %v239_v22 = vmul.f32 %v225_v19, %v210_v16  ;;  %v240_v23 = vmul.f32 %v225_v19, %v214_v17  ;;  %v243_v30 = vmul.f32 %v235_v18, %v210_v16  ;;  %v244_v36 = vmul.f32 %v235_v18, %v214_v17 }
  0x99   : > { %v253_v24 = vpop.permute.xlu1 %252  ;;  %v248_v25 = vpop.permute.xlu0 %247 }
  0x9a   : > { %v267_v26 = vadd.f32 %v253_v24, %v239_v22  ;;  %v268_v27 = vadd.f32 %v253_v24, %v240_v23  ;;  %v265_v28 = vadd.f32 %v248_v25, %v237_v20  ;;  %v266_v29 = vadd.f32 %v248_v25, %v238_v21 }
  0x9c   : > { %v275_v31 = vmul.f32 0.2, %v267_v26  ;;  %v276_v32 = vmul.f32 0.2, %v268_v27  ;;  %v273_v33 = vmul.f32 0.2, %v265_v28 }
  0x9d   : > { %v274_v37 = vmul.f32 0.2, %v266_v29  ;;  %v263_v38 = vpop.permute.xlu1 %262  ;;  %v258_v39 = vpop.permute.xlu0 %257 }
  0x9e   : > { %v283_v40 = vmax.f32 %v267_v26, %v275_v31  ;;  %v284_v41 = vmax.f32 %v268_v27, %v276_v32  ;;  %v281_v42 = vmax.f32 %v265_v28, %v273_v33  ;;  %v271_v43 = vadd.f32 %v263_v38, %v243_v30 }
  0x9f   : > { %v282_v44 = vmax.f32 %v266_v29, %v274_v37  ;;  %v272_v45 = vadd.f32 %v263_v38, %v244_v36  ;;  %v269_v46 = vadd.f32 %v258_v39, %v241_v34  ;;  %v270_v47 = vadd.f32 %v258_v39, %v242_v35 }
  0xa0   : > { %291 = vst [vmem:[%s186_s6 + $0x10] sm:$0xff] %v283_v40  ;;  %292 = vst [vmem:[%s186_s6 + $0x18] sm:$0xff] %v284_v41  ;;  %v279_v48 = vmul.f32 0.2, %v271_v43 }
  0xa1   : > { %289 = vst [vmem:[%s186_s6] sm:$0xff] %v281_v42  ;;  %290 = vst [vmem:[%s186_s6 + $0x8] sm:$0xff] %v282_v44  ;;  %v280_v49 = vmul.f32 0.2, %v272_v45  ;;  %v277_v50 = vmul.f32 0.2, %v269_v46 }
  0xa2   : > { %v278_v51 = vmul.f32 0.2, %v270_v47  ;;  %v287_v52 = vmax.f32 %v271_v43, %v279_v48 }
  0xa3   : > { %v288_v53 = vmax.f32 %v272_v45, %v280_v49  ;;  %v285_v54 = vmax.f32 %v269_v46, %v277_v50 }
  0xa4   : > { %v286_v55 = vmax.f32 %v270_v47, %v278_v51  ;;  %295 = vst [vmem:[%s186_s6 + $0x30] sm:$0xff] %v287_v52 }
  0xa5   : > { %296 = vst [vmem:[%s186_s6 + $0x38] sm:$0xff] %v288_v53  ;;  %293 = vst [vmem:[%s186_s6 + $0x20] sm:$0xff] %v285_v54 }
  0xa6   : > { %294 = vst [vmem:[%s186_s6 + $0x28] sm:$0xff] %v286_v55 }
  0xa7   : > { %475 = shalt.err (!%p472_p5)
}
  0xa8   : > { %s476_s23 = scalar_lea.hbm %s655_s10, 1024  ;;  %s480_s28 = scalar_lea.hbm %s709_s3, 2048 }
  0xa9   : > { %p477_p6 = scmp.ne.s32.totalorder %s655_s10, %s476_s23  ;;  %p481_p10 = scmp.lt.s32.totalorder %s655_s10, %s709_s3 }
  0xaa   : > { %p482_p11 = scmp.lt.s32.totalorder %s480_s28, %s476_s23 }
  0xab   : > { %p478_p7 = pnand %p477_p6, %p604_p4 }
  0xac   : > { %p483_p12 = por %p482_p11, %p481_p10 }
  0xad   : > { %p479_p9 = pneg %p478_p7 }
  0xaf   : > { %p484_p13 = pnand %p483_p12, %p479_p9 }
  0xb1   : > { %487 = shalt.err (!%p484_p13)
}
  0xb2   : > { %s542_s4 = smov 256   ;;  %s543_s5 = smov 16  }
  0xb3   : > { %402 = dma.vmem_to_hbm [thread:$0]  (%p604_p4), %s657_s7, 1024, %s655_s10, %s661_s15, %s542_s4, %s542_s4, %s543_s5  }
  0xb4 PF: > { %p408_p0 = scmp.ge.s32.totalorder %s538_s17, 2  ;;  %s328_s6 = sand.u32 1, %s518_s12  }
  0xb5   : > { %s329_s8 = scalar_lea.sflag [#allocation3], %s328_s6 }
  0xb6   : > { %p405_p1 = pnand %p408_p0, %p611_p8 }
  0xb8   : > { %p406_p2 = pneg %p405_p1 }
  0xba   : > { %513 = dma.done.wait (%p406_p2), %s329_s8, 1024  }
  0xbb   : > { %515 = vsyncadd (%p406_p2), %s329_s8, 4294966272  ;;  %s16_s17 = sadd.s32 1, %s538_s17   ;;  %s712_s12 = smov %s522_s13 }
  0xbc   : > { %p13_p3 = scmp.ge.s32.totalorder %s16_s17, 4   ;;  %s713_s13 = smov %s526_s14 }
  0xbd   : > { %s714_s14 = smov %s617_s25  ;;  %s715_s15 = smov %s534_s16 }
  0xbe   : > { %s716_s16 = smov %s718_s20  ;;  %15 = sbr.rel (!%p13_p3) target bundleno = 4 (0x4), region = 67 }
  0xc3   :  { %334 = vsyncpa [#allocation3], 1 }
  0xc4   :  { %336 = vsyncpa [#allocation3 + $0x1], 1 }

</bundles_post_ra>
